<compile_context>
chip_gen: v6e
topology: v6e:2x2x1
jax: 0.10.0
libtpu: 0.0.40
codegen_flags: <defaults>
</compile_context>

<pallas_src>
import functools

import jax
import jax.numpy as jnp
from jax.experimental import pallas as pl
from jax.experimental.pallas import tpu as pltpu


# --------------------------------- kernel --------------------------------- #

def attention_kernel(x_ref, wq_ref, wk_ref, wv_ref, wo_ref, bo_ref, o_ref, oslab_ref, *,
                     heads, dim_head):
    """One grid step == one batch element.

    x_ref      : (N, dim)       token tile for this batch element (compute dtype)
    wq/wk/wv   : (dim, inner)   projection weights; softmax scale pre-folded into wq
    wo_ref     : (inner, dim)   output-projection weight
    bo_ref     : (1, dim)       output-projection bias
    o_ref      : (N, dim)       output tile (f32)
    oslab_ref  : (N, inner)     VMEM scratch: lane-contiguous per-head attention outputs
    """
    x = x_ref[...]                                   # (N, dim)
    cdt = x.dtype                                    # compute dtype (f32 or bf16)

    # Lane-dense Q/K/V projections: output lane width = inner (multiple of 128 at real
    # ViT sizes), a single MXU matmul each.
    q = jnp.dot(x, wq_ref[...], preferred_element_type=cdt)   # (N, inner), scale folded in
    k = jnp.dot(x, wk_ref[...], preferred_element_type=cdt)
    v = jnp.dot(x, wv_ref[...], preferred_element_type=cdt)

    # Per-head attention over static slices of the lane-dense q/k/v.
    # TODO(synk): for heads >= ~12 move this loop onto a grid axis (or fori_loop over a
    # per-head index) to bound live ranges; at heads <= 8 the static unroll is cheap.
    for h in range(heads):
        sl = slice(h * dim_head, (h + 1) * dim_head)
        qh, kh, vh = q[:, sl], k[:, sl], v[:, sl]
        # s = q_h k_h^T  (scale already folded into wq); contract last dims, no transpose op.
        s = jax.lax.dot_general(qh, kh, (((1,), (1,)), ((), ())),
                                preferred_element_type=jnp.float32)       # (N, N), f32
        m = jnp.max(s, axis=-1, keepdims=True)
        p = jnp.exp(s - m)                                                # f32 softmax numerator
        num = jnp.dot(p.astype(cdt), vh, preferred_element_type=jnp.float32)  # (N, dh)
        den = jnp.sum(p, axis=-1, keepdims=True)                          # (N, 1)
        # normalize the small (N, dim_head) tensor, reciprocal routed to the EUP slot
        oslab_ref[:, sl] = (num * pl.reciprocal(den, approx=True)).astype(oslab_ref.dtype)

    # Single fused output projection over the whole slab (deep contraction K = inner).
    o_ref[...] = (jnp.dot(oslab_ref[...], wo_ref[...], preferred_element_type=jnp.float32)
                  + bo_ref[...].astype(jnp.float32)).astype(o_ref.dtype)
    # TODO(synk): nn.Dropout(p=0.0) is the identity at inference and is omitted.


# ------------------------- one-time parameter prep ------------------------- #

def prepare_params(params, *, heads, dim_head, dtype=jnp.float32):
    """Split wqkv into wq/wk/wv, fold the softmax scale into wq, cast to the compute dtype.

    Runs ONCE (outside the per-call forward)."""
    inner = heads * dim_head
    wqkv = params['wqkv']                    # == to_qkv.weight.T, (dim, 3*inner)
    scale = dim_head ** -0.5
    return dict(
        wq=(wqkv[:, 0 * inner:1 * inner] * scale).astype(dtype),
        wk=wqkv[:, 1 * inner:2 * inner].astype(dtype),
        wv=wqkv[:, 2 * inner:3 * inner].astype(dtype),
        wo=params['wo'].astype(dtype),       # == to_out[0].weight.T, (inner, dim)
        bo=params['bo'].reshape(1, -1).astype(dtype),
    )


def _vmem_limit_bytes(N, D, inner, cdt):
    bpe = jnp.dtype(cdt).itemsize
    est = (2 * N * D * bpe                                   # x tile, double buffered
           + 2 * N * D * 4                                   # out tile (f32), double buffered
           + 2 * (3 * D * inner + inner * D + D) * bpe       # weights (worst-case 2 buffers)
           + N * inner * max(bpe, 4)                         # output slab scratch
           + 3 * N * inner * 4                               # q, k, v intermediates
           + 2 * N * N * 4)                                  # scores + exp
    # at least 32 MiB (covers v5e's 16 MiB default scoped limit), capped at v7x's 64 MiB VMEM
    return int(min(64 * 1024 * 1024, max(32 * 1024 * 1024, 2 * est)))


# --------------------------------- wrapper --------------------------------- #

def attention_forward(x, prepped, *, heads, dim_head):
    """x: (B, N, dim).  prepped: output of prepare_params()."""
    B, N, D = x.shape
    inner = heads * dim_head
    wq, wk, wv, wo, bo = (prepped['wq'], prepped['wk'], prepped['wv'],
                          prepped['wo'], prepped['bo'])
    cdt = wq.dtype
    xc = x.astype(cdt)

    # TODO(synk): at real ViT sizes (N=197) pad N up to a multiple of 128 and mask padded
    # key columns to -inf before the softmax; the toy shapes here are full-extent blocks.

    kernel = functools.partial(attention_kernel, heads=heads, dim_head=dim_head)

    grid_spec = pltpu.PrefetchScalarGridSpec(
        num_scalar_prefetch=0,
        grid=(B,),
        in_specs=[
            pl.BlockSpec((None, N, D), lambda b: (b, 0, 0)),     # x: per-batch token tile
            pl.BlockSpec((D, inner), lambda b: (0, 0)),          # wq (constant block)
            pl.BlockSpec((D, inner), lambda b: (0, 0)),          # wk
            pl.BlockSpec((D, inner), lambda b: (0, 0)),          # wv
            pl.BlockSpec((inner, D), lambda b: (0, 0)),          # wo
            pl.BlockSpec((1, D), lambda b: (0, 0)),              # bo
        ],
        out_specs=pl.BlockSpec((None, N, D), lambda b: (b, 0, 0)),
        scratch_shapes=[pltpu.VMEM((N, inner), cdt)],            # per-head output slab
    )

    bpe = jnp.dtype(cdt).itemsize
    flops = B * (3 * 2 * N * D * inner          # q/k/v projections
                 + heads * 4 * N * N * dim_head  # qk^T + attn@v
                 + 2 * N * inner * D)            # output projection
    cost = pl.CostEstimate(
        flops=flops,
        transcendentals=B * heads * N * N,
        bytes_accessed=B * N * D * bpe + B * N * D * 4
                       + (3 * D * inner + inner * D + D) * bpe,
    )

    out = pl.pallas_call(
        kernel,
        grid_spec=grid_spec,
        out_shape=jax.ShapeDtypeStruct((B, N, D), jnp.float32),
        compiler_params=pltpu.CompilerParams(
            dimension_semantics=("parallel",),                   # megacore on v7x
            vmem_limit_bytes=_vmem_limit_bytes(N, D, inner, cdt),
        ),
        cost_estimate=cost,
    )(xc, wq, wk, wv, wo, bo)
    return out


# ----------------------------- plain-JAX reference ----------------------------- #

def attention_ref(x, wqkv, wo, bo, heads, dim_head):
    B, N, D = x.shape
    inner = heads * dim_head
    hp = jax.lax.Precision.HIGHEST
    qkv = jnp.einsum('bnd,de->bne', x, wqkv, precision=hp)
    q, k, v = jnp.split(qkv, 3, axis=-1)
    to_heads = lambda t: t.reshape(B, N, heads, dim_head).transpose(0, 2, 1, 3)
    q, k, v = map(to_heads, (q, k, v))
    dots = jnp.einsum('bhnd,bhmd->bhnm', q, k, precision=hp) * (dim_head ** -0.5)
    attn = jax.nn.softmax(dots, axis=-1)
    out = jnp.einsum('bhnm,bhmd->bhnd', attn, v, precision=hp)
    out = out.transpose(0, 2, 1, 3).reshape(B, N, inner)
    return jnp.einsum('bni,id->bnd', out, wo, precision=hp) + bo


if __name__ == "__main__":
    key = jax.random.PRNGKey(0)
    k1, k2, k3, k4 = jax.random.split(key, 4)
    B, N, dim, heads, dim_head = 2, 8, 32, 4, 8   # project_out=True (heads != 1)
    inner = heads * dim_head

    x = jax.random.normal(k1, (B, N, dim), jnp.float32)
    params = {
        'wqkv': 0.1 * jax.random.normal(k2, (dim, 3 * inner), jnp.float32),
        'wo':   0.1 * jax.random.normal(k3, (inner, dim), jnp.float32),
        'bo':   0.1 * jax.random.normal(k4, (dim,), jnp.float32),
    }

    ref = attention_ref(x, params['wqkv'], params['wo'], params['bo'], heads, dim_head)

    # --- f32 path (strict correctness check; approx reciprocal => slightly loose tol) ---
    prepped = prepare_params(params, heads=heads, dim_head=dim_head, dtype=jnp.float32)
    out = attention_forward(x, prepped, heads=heads, dim_head=dim_head)
    out = jax.block_until_ready(out)
    assert out.shape == (B, N, dim), out.shape
    assert bool(jnp.all(jnp.isfinite(out)))
    max_err = float(jnp.max(jnp.abs(out - ref)))
    assert jnp.allclose(out, ref, atol=5e-3, rtol=5e-3), max_err

    # --- bf16 MXU-operand path (v6e/v7x); softmax math stays f32 inside the kernel ---
    prepped_bf16 = prepare_params(params, heads=heads, dim_head=dim_head, dtype=jnp.bfloat16)
    out_bf16 = attention_forward(x, prepped_bf16, heads=heads, dim_head=dim_head)
    out_bf16 = jax.block_until_ready(out_bf16)
    assert bool(jnp.all(jnp.isfinite(out_bf16)))
    assert jnp.allclose(out_bf16, ref, atol=1e-1, rtol=1e-1)

    print("KERNEL_OK")
</pallas_src>

<mosaic_0001>
module attributes {stable_mosaic.version = 11 : i64} {
  func.func @attention_kernel(%arg0: i32, %arg1: memref<1x8x32xf32, #tpu.memory_space<vmem>>, %arg2: memref<32x32xf32, #tpu.memory_space<vmem>>, %arg3: memref<32x32xf32, #tpu.memory_space<vmem>>, %arg4: memref<32x32xf32, #tpu.memory_space<vmem>>, %arg5: memref<32x32xf32, #tpu.memory_space<vmem>>, %arg6: memref<1x32xf32, #tpu.memory_space<vmem>>, %arg7: memref<1x8x32xf32, #tpu.memory_space<vmem>>, %arg8: memref<8x32xf32, #tpu.memory_space<vmem>>) attributes {dimension_semantics = [#tpu.dimension_semantics<parallel>], iteration_bounds = array<i64: 2>, scalar_prefetch = 0 : i64, scratch_operands = 1 : i64, tpu.core_type = #tpu.core_type<tc>, window_params = [{transform_indices = @transform_0, window_bounds = array<i64: 1, 8, 32>}, {pipeline_mode = #tpu.pipeline_mode<synchronous>, transform_indices = @transform_1, window_bounds = array<i64: 32, 32>}, {pipeline_mode = #tpu.pipeline_mode<synchronous>, transform_indices = @transform_2, window_bounds = array<i64: 32, 32>}, {pipeline_mode = #tpu.pipeline_mode<synchronous>, transform_indices = @transform_3, window_bounds = array<i64: 32, 32>}, {pipeline_mode = #tpu.pipeline_mode<synchronous>, transform_indices = @transform_4, window_bounds = array<i64: 32, 32>}, {pipeline_mode = #tpu.pipeline_mode<synchronous>, transform_indices = @transform_5, window_bounds = array<i64: 1, 32>}, {transform_indices = @transform_6, window_bounds = array<i64: 1, 8, 32>}]} {
    %c0 = arith.constant 0 : index
    %c0_0 = arith.constant 0 : index
    %c0_1 = arith.constant 0 : index
    %0 = vector.load %arg1[%c0, %c0_0, %c0_1] : memref<1x8x32xf32, #tpu.memory_space<vmem>>, vector<1x8x32xf32>
    %1 = vector.shape_cast %0 : vector<1x8x32xf32> to vector<8x32xf32>
    %c0_2 = arith.constant 0 : index
    %c0_3 = arith.constant 0 : index
    %2 = vector.load %arg2[%c0_2, %c0_3] : memref<32x32xf32, #tpu.memory_space<vmem>>, vector<32x32xf32>
    %cst = arith.constant dense<0.000000e+00> : vector<8x32xf32>
    %3 = tpu.matmul %1, %2, %cst {dimension_numbers = #tpu.dot_dimension_numbers<[1], [0], [0], [1], [0, 0, 1, 1], [], []>} : vector<8x32xf32>, vector<32x32xf32>, vector<8x32xf32> -> vector<8x32xf32>
    %c0_4 = arith.constant 0 : index
    %c0_5 = arith.constant 0 : index
    %4 = vector.load %arg3[%c0_4, %c0_5] : memref<32x32xf32, #tpu.memory_space<vmem>>, vector<32x32xf32>
    %cst_6 = arith.constant dense<0.000000e+00> : vector<8x32xf32>
    %5 = tpu.matmul %1, %4, %cst_6 {dimension_numbers = #tpu.dot_dimension_numbers<[1], [0], [0], [1], [0, 0, 1, 1], [], []>} : vector<8x32xf32>, vector<32x32xf32>, vector<8x32xf32> -> vector<8x32xf32>
    %c0_7 = arith.constant 0 : index
    %c0_8 = arith.constant 0 : index
    %6 = vector.load %arg4[%c0_7, %c0_8] : memref<32x32xf32, #tpu.memory_space<vmem>>, vector<32x32xf32>
    %cst_9 = arith.constant dense<0.000000e+00> : vector<8x32xf32>
    %7 = tpu.matmul %1, %6, %cst_9 {dimension_numbers = #tpu.dot_dimension_numbers<[1], [0], [0], [1], [0, 0, 1, 1], [], []>} : vector<8x32xf32>, vector<32x32xf32>, vector<8x32xf32> -> vector<8x32xf32>
    %8 = vector.extract_strided_slice %3 {offsets = [0, 0], sizes = [8, 8], strides = [1, 1]} : vector<8x32xf32> to vector<8x8xf32>
    %9 = vector.extract_strided_slice %5 {offsets = [0, 0], sizes = [8, 8], strides = [1, 1]} : vector<8x32xf32> to vector<8x8xf32>
    %10 = vector.extract_strided_slice %7 {offsets = [0, 0], sizes = [8, 8], strides = [1, 1]} : vector<8x32xf32> to vector<8x8xf32>
    %cst_10 = arith.constant dense<0.000000e+00> : vector<8x8xf32>
    %11 = tpu.matmul %8, %9, %cst_10 {dimension_numbers = #tpu.dot_dimension_numbers<[1], [1], [0], [0], [0, 0, 1, 0], [], []>} : vector<8x8xf32>, vector<8x8xf32>, vector<8x8xf32> -> vector<8x8xf32>
    %cst_11 = arith.constant dense<0xFF800000> : vector<8xf32>
    %12 = vector.multi_reduction <maximumf>, %11, %cst_11 [1] : vector<8x8xf32> to vector<8xf32>
    %13 = vector.shape_cast %12 : vector<8xf32> to vector<8x1xf32>
    %14 = vector.broadcast %13 : vector<8x1xf32> to vector<8x8xf32>
    %15 = arith.subf %11, %14 : vector<8x8xf32>
    %16 = math.exp %15 : vector<8x8xf32>
    %cst_12 = arith.constant dense<0.000000e+00> : vector<8x8xf32>
    %17 = tpu.matmul %16, %10, %cst_12 {dimension_numbers = #tpu.dot_dimension_numbers<[1], [0], [0], [1], [0, 0, 1, 1], [], []>} : vector<8x8xf32>, vector<8x8xf32>, vector<8x8xf32> -> vector<8x8xf32>
    %cst_13 = arith.constant dense<0.000000e+00> : vector<8xf32>
    %18 = vector.multi_reduction <add>, %16, %cst_13 [1] : vector<8x8xf32> to vector<8xf32>
    %19 = vector.shape_cast %18 : vector<8xf32> to vector<8x1xf32>
    %20 = tpu.reciprocal %19 {approx = true} : vector<8x1xf32> -> vector<8x1xf32>
    %21 = vector.broadcast %20 : vector<8x1xf32> to vector<8x8xf32>
    %22 = arith.mulf %17, %21 : vector<8x8xf32>
    %c0_14 = arith.constant 0 : index
    %c0_15 = arith.constant 0 : index
    %23 = vector.load %arg8[%c0_14, %c0_15] : memref<8x32xf32, #tpu.memory_space<vmem>>, vector<8x8xf32>
    tpu.vector_store %arg8[%c0_14, %c0_15], %22 {strides = array<i32>} : memref<8x32xf32, #tpu.memory_space<vmem>>, vector<8x8xf32>,
    %24 = vector.extract_strided_slice %3 {offsets = [0, 8], sizes = [8, 8], strides = [1, 1]} : vector<8x32xf32> to vector<8x8xf32>
    %25 = vector.extract_strided_slice %5 {offsets = [0, 8], sizes = [8, 8], strides = [1, 1]} : vector<8x32xf32> to vector<8x8xf32>
    %26 = vector.extract_strided_slice %7 {offsets = [0, 8], sizes = [8, 8], strides = [1, 1]} : vector<8x32xf32> to vector<8x8xf32>
    %cst_16 = arith.constant dense<0.000000e+00> : vector<8x8xf32>
    %27 = tpu.matmul %24, %25, %cst_16 {dimension_numbers = #tpu.dot_dimension_numbers<[1], [1], [0], [0], [0, 0, 1, 0], [], []>} : vector<8x8xf32>, vector<8x8xf32>, vector<8x8xf32> -> vector<8x8xf32>
    %cst_17 = arith.constant dense<0xFF800000> : vector<8xf32>
    %28 = vector.multi_reduction <maximumf>, %27, %cst_17 [1] : vector<8x8xf32> to vector<8xf32>
    %29 = vector.shape_cast %28 : vector<8xf32> to vector<8x1xf32>
    %30 = vector.broadcast %29 : vector<8x1xf32> to vector<8x8xf32>
    %31 = arith.subf %27, %30 : vector<8x8xf32>
    %32 = math.exp %31 : vector<8x8xf32>
    %cst_18 = arith.constant dense<0.000000e+00> : vector<8x8xf32>
    %33 = tpu.matmul %32, %26, %cst_18 {dimension_numbers = #tpu.dot_dimension_numbers<[1], [0], [0], [1], [0, 0, 1, 1], [], []>} : vector<8x8xf32>, vector<8x8xf32>, vector<8x8xf32> -> vector<8x8xf32>
    %cst_19 = arith.constant dense<0.000000e+00> : vector<8xf32>
    %34 = vector.multi_reduction <add>, %32, %cst_19 [1] : vector<8x8xf32> to vector<8xf32>
    %35 = vector.shape_cast %34 : vector<8xf32> to vector<8x1xf32>
    %36 = tpu.reciprocal %35 {approx = true} : vector<8x1xf32> -> vector<8x1xf32>
    %37 = vector.broadcast %36 : vector<8x1xf32> to vector<8x8xf32>
    %38 = arith.mulf %33, %37 : vector<8x8xf32>
    %c0_20 = arith.constant 0 : index
    %c8 = arith.constant 8 : index
    %39 = vector.load %arg8[%c0_20, %c8] : memref<8x32xf32, #tpu.memory_space<vmem>>, vector<8x8xf32>
    tpu.vector_store %arg8[%c0_20, %c8], %38 {strides = array<i32>} : memref<8x32xf32, #tpu.memory_space<vmem>>, vector<8x8xf32>,
    %40 = vector.extract_strided_slice %3 {offsets = [0, 16], sizes = [8, 8], strides = [1, 1]} : vector<8x32xf32> to vector<8x8xf32>
    %41 = vector.extract_strided_slice %5 {offsets = [0, 16], sizes = [8, 8], strides = [1, 1]} : vector<8x32xf32> to vector<8x8xf32>
    %42 = vector.extract_strided_slice %7 {offsets = [0, 16], sizes = [8, 8], strides = [1, 1]} : vector<8x32xf32> to vector<8x8xf32>
    %cst_21 = arith.constant dense<0.000000e+00> : vector<8x8xf32>
    %43 = tpu.matmul %40, %41, %cst_21 {dimension_numbers = #tpu.dot_dimension_numbers<[1], [1], [0], [0], [0, 0, 1, 0], [], []>} : vector<8x8xf32>, vector<8x8xf32>, vector<8x8xf32> -> vector<8x8xf32>
    %cst_22 = arith.constant dense<0xFF800000> : vector<8xf32>
    %44 = vector.multi_reduction <maximumf>, %43, %cst_22 [1] : vector<8x8xf32> to vector<8xf32>
    %45 = vector.shape_cast %44 : vector<8xf32> to vector<8x1xf32>
    %46 = vector.broadcast %45 : vector<8x1xf32> to vector<8x8xf32>
    %47 = arith.subf %43, %46 : vector<8x8xf32>
    %48 = math.exp %47 : vector<8x8xf32>
    %cst_23 = arith.constant dense<0.000000e+00> : vector<8x8xf32>
    %49 = tpu.matmul %48, %42, %cst_23 {dimension_numbers = #tpu.dot_dimension_numbers<[1], [0], [0], [1], [0, 0, 1, 1], [], []>} : vector<8x8xf32>, vector<8x8xf32>, vector<8x8xf32> -> vector<8x8xf32>
    %cst_24 = arith.constant dense<0.000000e+00> : vector<8xf32>
    %50 = vector.multi_reduction <add>, %48, %cst_24 [1] : vector<8x8xf32> to vector<8xf32>
    %51 = vector.shape_cast %50 : vector<8xf32> to vector<8x1xf32>
    %52 = tpu.reciprocal %51 {approx = true} : vector<8x1xf32> -> vector<8x1xf32>
    %53 = vector.broadcast %52 : vector<8x1xf32> to vector<8x8xf32>
    %54 = arith.mulf %49, %53 : vector<8x8xf32>
    %c0_25 = arith.constant 0 : index
    %c16 = arith.constant 16 : index
    %55 = vector.load %arg8[%c0_25, %c16] : memref<8x32xf32, #tpu.memory_space<vmem>>, vector<8x8xf32>
    tpu.vector_store %arg8[%c0_25, %c16], %54 {strides = array<i32>} : memref<8x32xf32, #tpu.memory_space<vmem>>, vector<8x8xf32>,
    %56 = vector.extract_strided_slice %3 {offsets = [0, 24], sizes = [8, 8], strides = [1, 1]} : vector<8x32xf32> to vector<8x8xf32>
    %57 = vector.extract_strided_slice %5 {offsets = [0, 24], sizes = [8, 8], strides = [1, 1]} : vector<8x32xf32> to vector<8x8xf32>
    %58 = vector.extract_strided_slice %7 {offsets = [0, 24], sizes = [8, 8], strides = [1, 1]} : vector<8x32xf32> to vector<8x8xf32>
    %cst_26 = arith.constant dense<0.000000e+00> : vector<8x8xf32>
    %59 = tpu.matmul %56, %57, %cst_26 {dimension_numbers = #tpu.dot_dimension_numbers<[1], [1], [0], [0], [0, 0, 1, 0], [], []>} : vector<8x8xf32>, vector<8x8xf32>, vector<8x8xf32> -> vector<8x8xf32>
    %cst_27 = arith.constant dense<0xFF800000> : vector<8xf32>
    %60 = vector.multi_reduction <maximumf>, %59, %cst_27 [1] : vector<8x8xf32> to vector<8xf32>
    %61 = vector.shape_cast %60 : vector<8xf32> to vector<8x1xf32>
    %62 = vector.broadcast %61 : vector<8x1xf32> to vector<8x8xf32>
    %63 = arith.subf %59, %62 : vector<8x8xf32>
    %64 = math.exp %63 : vector<8x8xf32>
    %cst_28 = arith.constant dense<0.000000e+00> : vector<8x8xf32>
    %65 = tpu.matmul %64, %58, %cst_28 {dimension_numbers = #tpu.dot_dimension_numbers<[1], [0], [0], [1], [0, 0, 1, 1], [], []>} : vector<8x8xf32>, vector<8x8xf32>, vector<8x8xf32> -> vector<8x8xf32>
    %cst_29 = arith.constant dense<0.000000e+00> : vector<8xf32>
    %66 = vector.multi_reduction <add>, %64, %cst_29 [1] : vector<8x8xf32> to vector<8xf32>
    %67 = vector.shape_cast %66 : vector<8xf32> to vector<8x1xf32>
    %68 = tpu.reciprocal %67 {approx = true} : vector<8x1xf32> -> vector<8x1xf32>
    %69 = vector.broadcast %68 : vector<8x1xf32> to vector<8x8xf32>
    %70 = arith.mulf %65, %69 : vector<8x8xf32>
    %c0_30 = arith.constant 0 : index
    %c24 = arith.constant 24 : index
    %71 = vector.load %arg8[%c0_30, %c24] : memref<8x32xf32, #tpu.memory_space<vmem>>, vector<8x8xf32>
    tpu.vector_store %arg8[%c0_30, %c24], %70 {strides = array<i32>} : memref<8x32xf32, #tpu.memory_space<vmem>>, vector<8x8xf32>,
    %c0_31 = arith.constant 0 : index
    %c0_32 = arith.constant 0 : index
    %72 = vector.load %arg8[%c0_31, %c0_32] : memref<8x32xf32, #tpu.memory_space<vmem>>, vector<8x32xf32>
    %c0_33 = arith.constant 0 : index
    %c0_34 = arith.constant 0 : index
    %73 = vector.load %arg5[%c0_33, %c0_34] : memref<32x32xf32, #tpu.memory_space<vmem>>, vector<32x32xf32>
    %cst_35 = arith.constant dense<0.000000e+00> : vector<8x32xf32>
    %74 = tpu.matmul %72, %73, %cst_35 {dimension_numbers = #tpu.dot_dimension_numbers<[1], [0], [0], [1], [0, 0, 1, 1], [], []>} : vector<8x32xf32>, vector<32x32xf32>, vector<8x32xf32> -> vector<8x32xf32>
    %c0_36 = arith.constant 0 : index
    %c0_37 = arith.constant 0 : index
    %75 = vector.load %arg6[%c0_36, %c0_37] : memref<1x32xf32, #tpu.memory_space<vmem>>, vector<1x32xf32>
    %76 = vector.broadcast %75 : vector<1x32xf32> to vector<8x32xf32>
    %77 = arith.addf %74, %76 : vector<8x32xf32>
    %c0_38 = arith.constant 0 : index
    %c0_39 = arith.constant 0 : index
    %c0_40 = arith.constant 0 : index
    %78 = vector.load %arg7[%c0_38, %c0_39, %c0_40] : memref<1x8x32xf32, #tpu.memory_space<vmem>>, vector<1x8x32xf32>
    %79 = vector.shape_cast %78 : vector<1x8x32xf32> to vector<8x32xf32>
    %80 = vector.shape_cast %77 : vector<8x32xf32> to vector<1x8x32xf32>
    tpu.vector_store %arg7[%c0_38, %c0_39, %c0_40], %80 {strides = array<i32>} : memref<1x8x32xf32, #tpu.memory_space<vmem>>, vector<1x8x32xf32>,
    return
  }
  func.func @transform_0(%arg0: i32) -> (i32, i32, i32) {
    %c0_i32 = arith.constant 0 : i32
    %c0_i32_0 = arith.constant 0 : i32
    %c0_i32_1 = arith.constant 0 : i32
    return %arg0, %c0_i32, %c0_i32_0 : i32, i32, i32
  }
  func.func @transform_1(%arg0: i32) -> (i32, i32) {
    %c0_i32 = arith.constant 0 : i32
    %c0_i32_0 = arith.constant 0 : i32
    %c0_i32_1 = arith.constant 0 : i32
    return %c0_i32, %c0_i32_0 : i32, i32
  }
  func.func @transform_2(%arg0: i32) -> (i32, i32) {
    %c0_i32 = arith.constant 0 : i32
    %c0_i32_0 = arith.constant 0 : i32
    %c0_i32_1 = arith.constant 0 : i32
    return %c0_i32, %c0_i32_0 : i32, i32
  }
  func.func @transform_3(%arg0: i32) -> (i32, i32) {
    %c0_i32 = arith.constant 0 : i32
    %c0_i32_0 = arith.constant 0 : i32
    %c0_i32_1 = arith.constant 0 : i32
    return %c0_i32, %c0_i32_0 : i32, i32
  }
  func.func @transform_4(%arg0: i32) -> (i32, i32) {
    %c0_i32 = arith.constant 0 : i32
    %c0_i32_0 = arith.constant 0 : i32
    %c0_i32_1 = arith.constant 0 : i32
    return %c0_i32, %c0_i32_0 : i32, i32
  }
  func.func @transform_5(%arg0: i32) -> (i32, i32) {
    %c0_i32 = arith.constant 0 : i32
    %c0_i32_0 = arith.constant 0 : i32
    %c0_i32_1 = arith.constant 0 : i32
    return %c0_i32, %c0_i32_0 : i32, i32
  }
  func.func @transform_6(%arg0: i32) -> (i32, i32, i32) {
    %c0_i32 = arith.constant 0 : i32
    %c0_i32_0 = arith.constant 0 : i32
    %c0_i32_1 = arith.constant 0 : i32
    return %arg0, %c0_i32, %c0_i32_0 : i32, i32, i32
  }
}

</mosaic_0001>

<bundles_post_ra>
// kernel: tpu_custom_call.1
= control target key start
LH: loop header
LB: loop body
LE: loop exit
PB: predicated region body
PF: predicated region fallthrough
CT: control target
= control target key end

     0   :  { %s2277_s0 = inlined_call_operand.hbm [shape: f32[2,8,32], index: 0, kind: input, shape index: {}]   ;;  %s2278_s1 = inlined_call_operand.hbm [shape: f32[32,32], index: 1, kind: input, shape index: {}]   ;;  %s2279_s2 = inlined_call_operand.hbm [shape: f32[32,32], index: 2, kind: input, shape index: {}]   ;;  %s2280_s3 = inlined_call_operand.hbm [shape: f32[32,32], index: 3, kind: input, shape index: {}]   ;;  %s2281_s4 = inlined_call_operand.hbm [shape: f32[32,32], index: 4, kind: input, shape index: {}]   ;;  %s2282_s5 = inlined_call_operand.vmem [shape: f32[1,32], index: 5, kind: input, shape index: {}]   ;;  %s2283_s6 = inlined_call_operand.hbm [shape: f32[2,8,32], index: 6, kind: output, shape index: {}]  }
   0x1   :  { %2288 = sst [smem:[#allocation17_spill]] %s2278_s1 }
   0x2   :  { %11 = vsyncpa [#allocation4], 0 }
   0x3   :  { %13 = vsyncpa [#allocation4 + $0x1], 0 }
   0x4   :  { %14 = vsyncpa [#allocation7], 0 }
   0x5   :  { %15 = vsyncpa [#allocation10], 0 }
   0x6   :  { %16 = vsyncpa [#allocation5], 0 }
   0x7   :  { %18 = vsyncpa [#allocation5 + $0x1], 0  ;;  %s1963_s21 = smov 0   ;;  %s1965_s22 = smov 0  }
   0x8   :  { %s1967_s23 = smov 0   ;;  %s1969_s24 = smov 0  }
   0x9 LB: > { %s1912_s25 = smov [#allocation6]   ;;  %s1984_s27 = sadd.s32 4294967295, %s1910_s24   ;;  %s1910_s24 = sphi %s1969_s24, %s2309_s24   ;;  %s1906_s23 = sphi %s1967_s23, %s2308_s23   ;;  %s1902_s22 = sphi %s1965_s22, %s2307_s22   ;;  %s1898_s21 = sphi %s1963_s21, %s2306_s21  }
   0xa   : > { %s198_s26 = sshll.u32 %s1912_s25, 4  ;;  %p1437_p0 = scmp.ge.s32.totalorder %s1910_s24, 1  ;;  %s199_s26 = int_to_ptr.vmem [resolvable:$true] %s198_s26 }
   0xb   : > { %p2284_p1 = scmp.eq.s32.totalorder %s1984_s27, 0  ;;  %p186_p2 = scmp.lt.s32.totalorder %s1910_s24, 3 }
   0xc   : > { %s1913_s29 = smov [#allocation9]   ;;  %s1914_s8 = smov [#allocation8]  }
   0xd   : > { %p1989_p3 = pnand %p1437_p0, %p186_p2  ;;  %s224_s30 = sshll.u32 %s1913_s29, 4  ;;  %s2002_s30 = int_to_ptr.vmem [resolvable:$true] %s224_s30 }
   0xe   : > { %s211_s9 = sshll.u32 %s1914_s8, 4  ;;  %s1717_s10 = scalar_lea.vmem %s199_s26, 512  ;;  %s2004_s9 = int_to_ptr.vmem [resolvable:$true] %s211_s9 }
   0xf   : > { %s2289_s28 = scalar_select %p1989_p3, 1, 0 }
  0x10   : > { %p1613_p5 = pneg %p1989_p3  ;;  %p1718_p8 = scmp.ne.s32.totalorder %s199_s26, %s1717_s10 }
  0x11   : > { %p1725_p11 = scmp.lt.s32.totalorder %s199_s26, %s199_s26  ;;  %p1726_p12 = scmp.lt.s32.totalorder %s1717_s10, %s1717_s10 }
  0x12   : > { %p1998_p6 = pnand %p1613_p5, %p2284_p1 }
  0x13   : > { %p1727_p13 = por %p1726_p12, %p1725_p11 }
  0x14   : > { %p1708_p7 = pneg %p1998_p6 }
  0x16   : > { %p1720_p9 = pnand %p1718_p8, %p1708_p7 }
  0x18   : > { %p1721_p10 = pneg %p1720_p9 }
  0x1a   : > { %p1728_p0 = pnand %p1727_p13, %p1721_p10 }
  0x1c   : > { %1731 = shalt.err (!%p1728_p0)
}
  0x1d   : > { %s1915_s11 = smov 128   ;;  %s1916_s12 = smov 8  }
  0x1e   : > { %s2291_s1 = sld [smem:[#allocation17_spill]]  ;;  %s1743_s15 = scalar_lea.vmem %s2002_s30, 512 }
  0x1f   : > { %p1744_p2 = scmp.ne.s32.totalorder %s2002_s30, %s1743_s15  ;;  %p1751_p9 = scmp.lt.s32.totalorder %s2002_s30, %s2002_s30 }
  0x20   : > { %p1752_p10 = scmp.lt.s32.totalorder %s1743_s15, %s1743_s15 }
  0x21   : > { %p1746_p5 = pnand %p1744_p2, %p1708_p7 }
  0x22   : > { %p1753_p11 = por %p1752_p10, %p1751_p9 }
  0x23   : > { %p1747_p8 = pneg %p1746_p5 }
  0x24   : > { %1616 = dma.hbm_to_vmem [thread:$0]  (!%p1998_p6), %s2291_s1, 512, %s199_s26, [#allocation7], %s1915_s11, %s1915_s11, %s1916_s12  }
  0x25   : > { %p1754_p12 = pnand %p1753_p11, %p1747_p8 }
  0x27   : > { %1757 = shalt.err (!%p1754_p12)
}
  0x28   : > { %1622 = dma.hbm_to_vmem [thread:$0]  (!%p1998_p6), %s2280_s3, 512, %s2002_s30, [#allocation10], %s1915_s11, %s1915_s11, %s1916_s12  }
  0x29   : > { %s1769_s18 = scalar_lea.vmem %s2004_s9, 512  ;;  %p1777_p5 = scmp.lt.s32.totalorder %s2004_s9, %s2004_s9 }
  0x2a   : > { %p1770_p13 = scmp.ne.s32.totalorder %s2004_s9, %s1769_s18  ;;  %p1778_p8 = scmp.lt.s32.totalorder %s1769_s18, %s1769_s18 }
  0x2c   : > { %p1772_p0 = pnand %p1770_p13, %p1708_p7  ;;  %p1779_p9 = por %p1778_p8, %p1777_p5 }
  0x2e   : > { %p1773_p2 = pneg %p1772_p0 }
  0x30   : > { %p1780_p10 = pnand %p1779_p9, %p1773_p2 }
  0x32   : > { %1783 = shalt.err (!%p1780_p10)
}
  0x33   : > { %1619 = dma.hbm_to_vmem [thread:$0]  (!%p1998_p6), %s2279_s2, 512, %s2004_s9, [#allocation7], %s1915_s11, %s1915_s11, %s1916_s12  }
  0x34   : > { %s1917_s25 = smov [#allocation11]  }
  0x35   : > { %s237_s26 = sshll.u32 %s1917_s25, 4  ;;  %s238_s26 = int_to_ptr.vmem [resolvable:$true] %s237_s26 }
  0x36   : > { %s1795_s29 = scalar_lea.vmem %s238_s26, 512  ;;  %p1803_p0 = scmp.lt.s32.totalorder %s238_s26, %s238_s26 }
  0x37   : > { %p1796_p11 = scmp.ne.s32.totalorder %s238_s26, %s1795_s29  ;;  %p1804_p2 = scmp.lt.s32.totalorder %s1795_s29, %s1795_s29 }
  0x39   : > { %p1798_p12 = pnand %p1796_p11, %p1708_p7  ;;  %p1805_p5 = por %p1804_p2, %p1803_p0 }
  0x3b   : > { %p1799_p13 = pneg %p1798_p12 }
  0x3d   : > { %p1806_p8 = pnand %p1805_p5, %p1799_p13 }
  0x3f   : > { %1809 = shalt.err (!%p1806_p8)
}
  0x40   : > { %1625 = dma.hbm_to_vmem [thread:$0]  (!%p1998_p6), %s2281_s4, 512, %s238_s26, [#allocation10], %s1915_s11, %s1915_s11, %s1916_s12  }
  0x41   : > { %s1436_s7 = sadd.s32 4294967294, %s1910_s24   ;;  %s2064_s9 = sadd.s32 1, %s1910_s24  }
  0x42   : > { %s28_s10 = ssub.s32 %s1910_s24, %s2064_s9  ;;  %s31_s13 = sadd.s32 1, %s1906_s23 }
  0x43   : > { %p29_p7 = scmp.eq.s32.totalorder %s28_s10, 0  ;;  %p38_p9 = scmp.ne.s32.totalorder %s1906_s23, %s1902_s22 }
  0x44   : > { %p39_p10 = scmp.eq.s32.totalorder %s1910_s24, 0  ;;  %p44_p11 = scmp.ne.s32.totalorder %s1902_s22, %s1898_s21 }
  0x45   : > { %s2075_s14 = scalar_select %p29_p7, %s1906_s23, %s31_s13  }
  0x46   : > { %p2077_p12 = por %p39_p10, %p38_p9  ;;  %p2083_p6 = por %p2284_p1, %p44_p11 }
  0x47   : > { %p173_p13 = scmp.eq.s32.totalorder %s1984_s27, 1  ;;  %p179_p0 = scmp.eq.s32.totalorder %s1436_s7, 1 }
  0x48   : > { %s2293_s11 = scalar_select %p2083_p6, 1, 0 }
  0x49   : > { %p1638_p2 = scmp.lt.s32.totalorder %s1910_s24, 2  ;;  %s254_s12 = sand.u32 1, %s1906_s23  }
  0x4a   : > { %p2090_p5 = por %p173_p13, %p38_p9  ;;  %p2094_p8 = por %p179_p0, %p44_p11 }
  0x4b   : > { %s1443_s18 = sshll.u32 %s254_s12, 3  ;;  %s1444_s19 = sshll.u32 %s1910_s24, 7 }
  0x4c   : > { %s2294_s16 = scalar_select %p2090_p5, 1, 0 }
  0x4d   : > { %s2295_s17 = scalar_select %p2094_p8, 1, 0 }
  0x4e   : > { %s2102_s26 = scalar_lea.hbm %s2277_s0, %s1444_s19  ;;  %s258_s29 = scalar_lea.vmem [#allocation3], %s1443_s18 }
  0x4f   : > { %s265_s30 = sshll.u32 %s258_s29, 4  ;;  %p2106_p7 = pnand %p1638_p2, %p2077_p12  ;;  %s266_s30 = int_to_ptr.vmem [resolvable:$true] %s265_s30 }
  0x50   : > { %s255_s7 = scalar_lea.sflag [#allocation4], %s254_s12  ;;  %s1810_s10 = scalar_lea.hbm %s2102_s26, 128 }
  0x51   : > { %p1811_p9 = scmp.ne.s32.totalorder %s2102_s26, %s1810_s10  ;;  %p1812_p10 = pneg %p2106_p7 }
  0x52   : > { %s1815_s20 = scalar_lea.hbm %s2277_s0, 256  ;;  %p1816_p0 = scmp.lt.s32.totalorder %s2102_s26, %s2277_s0 }
  0x53   : > { %p1813_p11 = pnand %p1812_p10, %p1811_p9  ;;  %p1817_p12 = scmp.lt.s32.totalorder %s1815_s20, %s1810_s10 }
  0x55   : > { %p1814_p13 = pneg %p1813_p11  ;;  %p1818_p2 = por %p1817_p12, %p1816_p0 }
  0x57   : > { %p1819_p4 = pnand %p1818_p2, %p1814_p13 }
  0x59   : > { %1822 = shalt.err (!%p1819_p4)
}
  0x5a   : > { %s1823_s15 = scalar_lea.vmem %s266_s30, 128  ;;  %s1918_s12 = smov [#allocation3]  }
  0x5b   : > { %p1824_p1 = scmp.ne.s32.totalorder %s266_s30, %s1823_s15  ;;  %s1828_s29 = sshll.u32 %s1918_s12, 4  ;;  %s1829_s29 = int_to_ptr.vmem [resolvable:$false] %s1828_s29 }
  0x5c   : > { %s1830_s1 = scalar_lea.vmem %s1829_s29, 256  ;;  %p1831_p9 = scmp.lt.s32.totalorder %s266_s30, %s1829_s29 }
  0x5d   : > { %p1826_p8 = pnand %p1824_p1, %p1812_p10  ;;  %p1832_p11 = scmp.lt.s32.totalorder %s1830_s1, %s1823_s15 }
  0x5f   : > { %p1827_p5 = pneg %p1826_p8  ;;  %p1833_p6 = por %p1832_p11, %p1831_p9 }
  0x61   : > { %p1834_p3 = pnand %p1833_p6, %p1827_p5 }
  0x63   : > { %1837 = shalt.err (!%p1834_p3)
}
  0x64   : > { %1629 = dma.hbm_to_vmem [thread:$0]  (!%p2106_p7), %s2102_s26, 128, %s266_s30, %s255_s7  }
  0x65   : > { %p2297_p13 = scmp.ne.s32.totalorder %s2289_s28, 0 }
  0x66   : > { %s2127_s10 = sand.u32 (!%p2297_p13), 1, %s1902_s22   ;;  %p2298_p1 = scmp.ne.s32.totalorder (!%p2297_p13), %s2293_s11, 0 }
  0x67   : > { %274 = sbr.rel (%p2297_p13) target bundleno = 1559 (0x617), region = 44  ;;  %s1446_s13 = sshll.u32 (!%p2297_p13), %s2127_s10, 3 }
  0x68   : > { %s277_s19 = scalar_lea.sflag (!%p2297_p13), [#allocation4], %s2127_s10  ;;  %s2133_s1 = scalar_lea.vmem (!%p2297_p13), [#allocation3], %s1446_s13 }
  0x6c   : > { %1881 = dma.done.wait (%p2298_p1), %s277_s19, 128  }
  0x6d   : > { %1883 = vsyncadd (%p2298_p1), %s277_s19, 4294967168  ;;  %p2299_p3 = scmp.eq.s32.totalorder %s1984_s27, 0 }
  0x6f   : > { %1885 = dma.done.wait (%p2299_p3), [#allocation7], 1024   ;;  %p2300_p4 = pmov %p2299_p3 }
  0x70   : > { %p2301_p6 = pmov %p2299_p3 }
  0x71   : > { %1887 = vsyncadd (%p2300_p4), [#allocation7], 4294966272 }
  0x72   : > { %1889 = dma.done.wait (%p2301_p6), [#allocation10], 1024   ;;  %p2302_p5 = pmov %p2299_p3 }
  0x73   : > { %v1919_v0 = vmov 0.0   ;;  %vm1920_vm0 = vmmov 0   ;;  %v329_v1 = vld [vmem:[#allocation6 + $0x18] sm:$0xff]  ;;  %v328_v3 = vld [vmem:[#allocation6 + $0x10] sm:$0xff]  ;;  %v327_v5 = vld [vmem:[#allocation6 + $0x8] sm:$0xff]  ;;  %vm330_vm1 = vcmask 261120  }
  0x74   : > { %1891 = vsyncadd (%p2302_p5), [#allocation10], 4294966272  ;;  %1509 = vmatprep.subr.mxu0 %v1919_v0  ;;  %1520 = vmatprep.subr.mxu1 %v1919_v0  ;;  %v407_v2 = vld [vmem:[#allocation8 + $0x18] sm:$0xff]  ;;  %v406_v4 = vld [vmem:[#allocation8 + $0x10] sm:$0xff]  ;;  %vm552_vm2 = vcmask 64512   ;;  %s1921_s28 = smov 120  }
  0x75   : > { %1517 = vmatprep.mubr.msk.f32.mxu0 %vm1920_vm0, %v1919_v0  ;;  %1528 = vmatprep.mubr.msk.f32.mxu1 %vm1920_vm0, %v1919_v0  ;;  %v405_v6 = vld [vmem:[#allocation8 + $0x8] sm:$0xff]  ;;  %v326_v7 = vld [vmem:[#allocation6] sm:$0xff]  ;;  %v325_v9 = vld [vmem:[%s2133_s1] sm:$0xff]  ;;  %s1922_s11 = smov 112   ;;  %s1923_s26 = smov 104   ;;  %vm884_vm3 = vcmask 130112  }
  0x76   : > { %1510 = vmatpush3.msra.mxu0 %v329_v1  ;;  %1521 = vmatpush3.msra.mxu1 %v407_v2  ;;  %v404_v8 = vld [vmem:[#allocation8] sm:$0xff]  ;;  %v481_v10 = vld [vmem:[#allocation9 + $0x18] sm:$0xff]  ;;  %v480_v11 = vld [vmem:[#allocation9 + $0x10] sm:$0xff]  ;;  %s1924_s30 = smov 8   ;;  %s1925_s8 = smov 16   ;;  %vm1055_vm4 = vcmask 195712  }
  0x77   : > { %1511 = vmatprep.subr.mxu0 %v1919_v0  ;;  %1522 = vmatprep.subr.mxu1 %v1919_v0  ;;  %v479_v12 = vld [vmem:[#allocation9 + $0x8] sm:$0xff]  ;;  %v478_v13 = vld [vmem:[#allocation9] sm:$0xff]  ;;  %s1926_s7 = smov 24   ;;  %vm1226_vm5 = vcmask 261312   ;;  %s1470_s25 = sshll.u32 %s1984_s27, 7 }
  0x78   : > { %1512 = vmatpush3.msra.mxu0 %v328_v3  ;;  %1523 = vmatpush3.msra.mxu1 %v406_v4  ;;  %s324_s15 = scalar_lea.vmem [#allocation12], %s1446_s13  ;;  %s2239_s1 = scalar_lea.hbm %s2283_s6, %s1470_s25 }
  0x79   : > { %1513 = vmatprep.subr.mxu0 %v1919_v0  ;;  %1524 = vmatprep.subr.mxu1 %v1919_v0  ;;  %s1328_s12 = sshll.u32 %s324_s15, 4  ;;  %p2303_p7 = scmp.ne.s32.totalorder %s2294_s16, 0  ;;  %s1329_s12 = int_to_ptr.vmem [resolvable:$true] %s1328_s12 }
  0x7a   : > { %1514 = vmatpush3.msra.mxu0 %v327_v5  ;;  %1525 = vmatpush3.msra.mxu1 %v405_v6  ;;  %v1232_v6 = vld [vmem:[#allocation11 + $0x18] sm:$0xff]  ;;  %s1927_s27 = smov [#allocation12]  }
  0x7b   : > { %1515 = vmatprep.subr.mxu0 %v1919_v0  ;;  %1526 = vmatprep.subr.mxu1 %v1919_v0  ;;  %s1842_s13 = sshll.u32 %s1927_s27, 4  ;;  %s1843_s13 = int_to_ptr.vmem [resolvable:$false] %s1842_s13 }
  0x7c   : > { %1516 = vmatpush3.msra.mxu0 %v326_v7  ;;  %1527 = vmatpush3.msra.mxu1 %v404_v8  ;;  %v1231_v7 = vld [vmem:[#allocation11 + $0x10] sm:$0xff]  ;;  %p1845_p12 = scmp.lt.s32.totalorder %s1329_s12, %s1843_s13 }
  0x7d   : > { %1518 = vmatmul.mubr.msk.f32.vlgmr.msra.gmra.mxu0 %vm330_vm1, %v325_v9  ;;  %1529 = vmatmul.mubr.msk.f32.vlgmr.msra.gmra.mxu1 %vm330_vm1, %v325_v9 }
  0x7e   : > { %1542 = vmatprep.subr.mxu1 %v1919_v0  ;;  %1544 = vmatprep.mubr.msk.f32.mxu1 %vm1920_vm0, %v1919_v0 }
  0x7f   : > { %1531 = vmatprep.subr.mxu0 %v1919_v0  ;;  %1539 = vmatprep.mubr.msk.f32.mxu0 %vm1920_vm0, %v1919_v0 }
  0x80   : > { %1532 = vmatpush3.msra.mxu0 %v481_v10  ;;  %v1230_v10 = vld [vmem:[#allocation11 + $0x8] sm:$0xff] }
  0x81   : > { %1533 = vmatprep.subr.mxu0 %v1919_v0 }
  0x82   : > { %1534 = vmatpush3.msra.mxu0 %v480_v11 }
  0x83   : > { %1535 = vmatprep.subr.mxu0 %v1919_v0 }
  0x84   : > { %1536 = vmatpush3.msra.mxu0 %v479_v12 }
  0x85   : > { %1537 = vmatprep.subr.mxu0 %v1919_v0 }
  0x86   : > { %1538 = vmatpush3.msra.mxu0 %v478_v13  ;;  %v1229_v13 = vld [vmem:[#allocation11] sm:$0xff] }
  0x87   : > { %1562 = vmatprep.subr.mxu0 %v1919_v0  ;;  %1540 = vmatmul.mubr.msk.f32.vlgmr.msra.gmra.mxu0 %vm330_vm1, %v325_v9 }
  0x88   : > { %1564 = vmatprep.mubr.msk.f32.mxu0 %vm1920_vm0, %v1919_v0 }
 0x13d   : > { %v400_v14 = vpop.f32.mrf.mxu0  ;;  %v474_v15 = vpop.f32.mrf.mxu1 }
 0x13e   : > { %1543 = vmatpush3.xpose.msk.msra.mxu1 %vm552_vm2, %v474_v15  ;;  %714 = vrot.lane.b32.xlu1 %v400_v14, %s1921_s28 }
 0x13f   : > { %v1530_v16 = vpop.f32.mrf.mxu1  ;;  %v1519_v17 = vpop.f32.mrf.mxu0  ;;  %1547 = vmatprep.subr.mxu1 %v1919_v0 }
 0x141   : > { %1545 = vmatmul.mubr.msk.f32.vlgmr.msra.gmra.mxu1 %vm552_vm2, %v400_v14 }
 0x142   : > { %888 = vrot.lane.b32.xlu1 %v474_v15, %s1922_s11  ;;  %1549 = vmatprep.mubr.msk.f32.mxu1 %vm1920_vm0, %v1919_v0 }
 0x146   : > { %886 = vrot.lane.b32.xlu1 %v400_v14, %s1922_s11 }
 0x147   : > { %v548_v23 = vpop.f32.mrf.mxu0 }
 0x148   : > { %1548 = vmatpush3.msra.mxu1 %v548_v23 }
 0x149   : > { %v1541_v24 = vpop.f32.mrf.mxu0  ;;  %1552 = vmatprep.subr.mxu1 %v1919_v0 }
 0x14a   : > { %1059 = vrot.lane.b32.xlu1 %v474_v15, %s1923_s26 }
 0x14e   : > { %1057 = vrot.lane.b32.xlu1 %v400_v14, %s1923_s26 }
 0x1b0   : > { %v715_v18 = vpop.permute.xlu1 %714 }
 0x1b4   : > { %v889_v19 = vpop.permute.xlu1 %888 }
 0x1b5   : > { %1563 = vmatpush3.xpose.msk.msra.mxu0 %vm552_vm2, %v889_v19 }
 0x1b6   : > { %1572 = vmatprep.subr.mxu0 %v1919_v0 }
 0x1b8   : > { %v887_v20 = vpop.permute.xlu1 %886 }
 0x1b9   : > { %1565 = vmatmul.mubr.msk.f32.vlgmr.msra.gmra.mxu0 %vm552_vm2, %v887_v20 }
 0x1ba   : > { %1574 = vmatprep.mubr.msk.f32.mxu0 %vm1920_vm0, %v1919_v0 }
 0x1bc   : > { %v1060_v21 = vpop.permute.xlu1 %1059 }
 0x1bd   : > { %1573 = vmatpush3.xpose.msk.msra.mxu0 %vm552_vm2, %v1060_v21 }
 0x1be   : > { %1582 = vmatprep.subr.mxu0 %v1919_v0 }
 0x1c0   : > { %v1058_v22 = vpop.permute.xlu1 %1057 }
 0x1c1   : > { %1575 = vmatmul.mubr.msk.f32.vlgmr.msra.gmra.mxu0 %vm552_vm2, %v1058_v22 }
 0x1c2   : > { %1590 = vmatprep.mubr.msk.f32.mxu0 %vm1920_vm0, %v1919_v0  ;;  %1583 = vmatpush3.msra.mxu0 %v1232_v6 }
 0x1c3   : > { %1584 = vmatprep.subr.mxu0 %v1919_v0 }
 0x1c4   : > { %1585 = vmatpush3.msra.mxu0 %v1231_v7 }
 0x1c5   : > { %1586 = vmatprep.subr.mxu0 %v1919_v0 }
 0x1c6   : > { %1587 = vmatpush3.msra.mxu0 %v1230_v10 }
 0x1c7   : > { %1588 = vmatprep.subr.mxu0 %v1919_v0 }
 0x1c8   : > { %1589 = vmatpush3.msra.mxu0 %v1229_v13 }
 0x201   : > { %v625_v25 = vpop.f32.mrf.mxu1 }
 0x202   : > { %v629_v26 = vsel %vm552_vm2, %v625_v25, -inf }
 0x203   : > { %630 = vmax.xlane.f32.xlu0 %v629_v26  ;;  %v1546_v27 = vpop.f32.mrf.mxu1 }
 0x219   : > { %716 = vrot.lane.b32.xlu0 %v474_v15, %s1921_s28 }
 0x279   : > { %v960_v28 = vpop.f32.mrf.mxu0 }
 0x27a   : > { %v964_v29 = vsel %vm552_vm2, %v960_v28, -inf }
 0x27b   : > { %965 = vmax.xlane.f32.xlu0 %v964_v29  ;;  %v1566_v30 = vpop.f32.mrf.mxu0 }
 0x281   : > { %v1131_v31 = vpop.f32.mrf.mxu0 }
 0x282   : > { %v1135_v32 = vsel %vm552_vm2, %v1131_v31, -inf }
 0x283   : > { %1136 = vmax.xlane.f32.xlu1 %v1135_v32  ;;  %v1576_v33 = vpop.f32.mrf.mxu0 }
 0x28c   : > { %v631_v34 = vpop.xlane.xlu0 %630 }
 0x28d   : > { %v632_v35 = vsub.f32 %v625_v25, %v631_v34  ;;  %v1467_v25 = vld [vmem:[%s2282_s5] ss:$0 sm:$0xff] }
 0x28f   : > { %v633_v36 = vmul.f32 1.442695, %v632_v35 }
 0x290   : > { %v717_v38 = vpop.permute.xlu0 %716 }
 0x291   : > { %1690 = vpow2.f32 %v633_v36  ;;  %799 = vrot.lane.b32.xlu0 %v548_v23, %s1921_s28  ;;  %s1315_s28 = scalar_lea.sflag [#allocation5], %s2127_s10 }
 0x29e   : > { %v1691_v37 = vpop.eup %1690 }
 0x29f   : > { %1550 = vmatmul.mubr.msk.f32.vlgmr.msra.gmra.mxu1 %vm552_vm2, %v1691_v37  ;;  %v708_v62 = vsel %vm552_vm2, %v1691_v37, 0.0 }
 0x2a0   : > { %1553 = vmatpush3.xpose.msk.msra.mxu1 %vm552_vm2, %v717_v38  ;;  %1554 = vmatprep.mubr.msk.f32.mxu1 %vm1920_vm0, %v1919_v0 }
 0x2a1   : > { %1557 = vmatprep.subr.mxu1 %v1919_v0 }
 0x2a3   : > { %1555 = vmatmul.mubr.msk.f32.vlgmr.msra.gmra.mxu1 %vm552_vm2, %v715_v18 }
 0x2a4   : > { %1559 = vmatprep.mubr.msk.f32.mxu1 %vm1920_vm0, %v1919_v0 }
 0x304   : > { %v966_v39 = vpop.xlane.xlu0 %965 }
 0x305   : > { %v967_v46 = vsub.f32 %v960_v28, %v966_v39 }
 0x307   : > { %v968_v47 = vmul.f32 1.442695, %v967_v46 }
 0x308   : > { %v800_v40 = vpop.permute.xlu0 %799 }
 0x309   : > { %1558 = vmatpush3.msra.mxu1 %v800_v40  ;;  %1692 = vpow2.f32 %v968_v47 }
 0x30a   : > { %1567 = vmatprep.subr.mxu1 %v1919_v0 }
 0x30c   : > { %v1137_v50 = vpop.xlane.xlu1 %1136 }
 0x30d   : > { %v1138_v51 = vsub.f32 %v1131_v31, %v1137_v50 }
 0x30f   : > { %v1139_v54 = vmul.f32 1.442695, %v1138_v51 }
 0x316   : > { %v1693_v48 = vpop.eup %1692 }
 0x317   : > { %v1046_v49 = vsel %vm552_vm2, %v1693_v48, 0.0 }
 0x35f   : > { %v704_v41 = vpop.f32.mrf.mxu1 }
 0x361   : > { %v1551_v42 = vpop.f32.mrf.mxu1 }
 0x363   : > { %v788_v43 = vpop.f32.mrf.mxu1 }
 0x364   : > { %v792_v44 = vsel %vm552_vm2, %v788_v43, -inf }
 0x365   : > { %v1556_v45 = vpop.f32.mrf.mxu1  ;;  %793 = vmax.xlane.f32.xlu1 %v792_v44 }
 0x376   : > { %970 = vrot.lane.b32.xlu1 %v548_v23, %s1922_s11  ;;  %s1838_s11 = scalar_lea.vmem %s1329_s12, 128 }
 0x377   : > { %p1839_p8 = scmp.ne.s32.totalorder %s1329_s12, %s1838_s11 }
 0x379   : > { %p1840_p10 = pnand %p1839_p8, %p2303_p7 }
 0x37a   : > { %1141 = vrot.lane.b32.xlu1 %v548_v23, %s1923_s26  ;;  %s1844_s26 = scalar_lea.vmem %s1843_s13, 256 }
 0x37b   : > { %p1841_p0 = pneg %p1840_p10  ;;  %p1846_p2 = scmp.lt.s32.totalorder %s1844_s26, %s1838_s11 }
 0x37d   : > { %p1847_p9 = por %p1846_p2, %p1845_p12 }
 0x37f   : > { %p1848_p11 = pnand %p1847_p9, %p1841_p0 }
 0x39e   : > { %1047 = vadd.xlane.f32.xlu1 %v1046_v49 }
 0x3ee   : > { %v794_v52 = vpop.xlane.xlu1 %793 }
 0x3ef   : > { %v795_v53 = vsub.f32 %v788_v43, %v794_v52 }
 0x3f1   : > { %v796_v55 = vmul.f32 1.442695, %v795_v53 }
 0x3f2   : > { %v971_v56 = vpop.permute.xlu1 %970 }
 0x3f3   : > { %1694 = vpow2.f32 %v796_v55 }
 0x3f4   : > { %1696 = vpow2.f32 %v1139_v54 }
 0x3f6   : > { %v1142_v60 = vpop.permute.xlu1 %1141 }
 0x400   : > { %v1695_v57 = vpop.eup %1694 }
 0x401   : > { %1560 = vmatmul.mubr.msk.f32.vlgmr.msra.gmra.mxu1 %vm552_vm2, %v1695_v57  ;;  %v875_v58 = vsel %vm552_vm2, %v1695_v57, 0.0  ;;  %v1697_v59 = vpop.eup %1696 }
 0x402   : > { %1568 = vmatpush3.msra.mxu1 %v971_v56  ;;  %876 = vadd.xlane.f32.xlu0 %v875_v58  ;;  %v1217_v61 = vsel %vm552_vm2, %v1697_v59, 0.0 }
 0x403   : > { %1569 = vmatprep.mubr.msk.f32.mxu1 %vm1920_vm0, %v1919_v0  ;;  %1577 = vmatprep.subr.mxu1 %v1919_v0 }
 0x405   : > { %1570 = vmatmul.mubr.msk.f32.vlgmr.msra.gmra.mxu1 %vm552_vm2, %v1693_v48 }
 0x406   : > { %1578 = vmatpush3.msra.mxu1 %v1142_v60  ;;  %1218 = vadd.xlane.f32.xlu0 %v1217_v61 }
 0x407   : > { %1579 = vmatprep.mubr.msk.f32.mxu1 %vm1920_vm0, %v1919_v0 }
 0x409   : > { %1580 = vmatmul.mubr.msk.f32.vlgmr.msra.gmra.mxu1 %vm552_vm2, %v1697_v59 }
 0x40a   : > { %709 = vadd.xlane.f32.xlu0 %v708_v62 }
 0x427   : > { %v1048_v5 = vpop.xlane.xlu1 %1047 }
 0x48b   : > { %v877_v63 = vpop.xlane.xlu0 %876 }
 0x48f   : > { %v1219_v1 = vpop.xlane.xlu0 %1218 }
 0x493   : > { %v710_v2 = vpop.xlane.xlu0 %709 }
 0x494   : > { %1698 = vrcp.f32 %v710_v2 }
 0x495   : > { %1700 = vrcp.f32 %v877_v63 }
 0x496   : > { %1702 = vrcp.f32 %v1048_v5 }
 0x497   : > { %1704 = vrcp.f32 %v1219_v1 }
 0x4a1   : > { %v1699_v3 = vpop.eup %1698 }
 0x4a2   : > { %v712_v4 = vmul.f32 %v1699_v3, %v704_v41  ;;  %v1701_v8 = vpop.eup %1700 }
 0x4a3   : > { %v1703_v14 = vpop.eup %1702 }
 0x4a4   : > { %713 = vst.msk [vmem:[#allocation2] sm:$0xff] %vm552_vm2, %v712_v4  ;;  %v1705_v18 = vpop.eup %1704 }
 0x4c1   : > { %v871_v9 = vpop.f32.mrf.mxu1 }
 0x4c2   : > { %v879_v11 = vmul.f32 %v1701_v8, %v871_v9 }
 0x4c3   : > { %v1561_v12 = vpop.f32.mrf.mxu1 }
 0x4c4   : > { %881 = vrot.lane.b32.xlu1 %v879_v11, %s1924_s30 }
 0x4c5   : > { %v1042_v15 = vpop.f32.mrf.mxu1 }
 0x4c6   : > { %v1050_v16 = vmul.f32 %v1703_v14, %v1042_v15 }
 0x4c7   : > { %v1571_v17 = vpop.f32.mrf.mxu1 }
 0x4c8   : > { %1052 = vrot.lane.b32.xlu0 %v1050_v16, %s1925_s8 }
 0x4c9   : > { %v1213_v19 = vpop.f32.mrf.mxu1 }
 0x4ca   : > { %v1221_v20 = vmul.f32 %v1705_v18, %v1213_v19 }
 0x4cb   : > { %v1581_v21 = vpop.f32.mrf.mxu1 }
 0x4cc   : > { %1223 = vrot.lane.b32.xlu1 %v1221_v20, %s1926_s7 }
 0x536   : > { %v882_v22 = vpop.permute.xlu1 %881 }
 0x537   : > { %885 = vst.msk [vmem:[#allocation2] sm:$0xff] %vm884_vm3, %v882_v22 }
 0x53a   : > { %v1053_v23 = vpop.permute.xlu0 %1052 }
 0x53b   : > { %1056 = vst.msk [vmem:[#allocation2] sm:$0xff] %vm1055_vm4, %v1053_v23 }
 0x53e   : > { %v1224_v0 = vpop.permute.xlu1 %1223 }
 0x53f   : > { %1227 = vst.msk [vmem:[#allocation2] sm:$0xff] %vm1226_vm5, %v1224_v0 }
 0x546   : > { %v1228_v24 = vld [vmem:[#allocation2] sm:$0xff] }
 0x547   : > { %1591 = vmatmul.mubr.msk.f32.vlgmr.msra.gmra.mxu0 %vm330_vm1, %v1228_v24 }
 0x607   : > { %v1309_v26 = vpop.f32.mrf.mxu0 }
 0x608   : > { %v1310_v27 = vadd.f32 %v1467_v25, %v1309_v26 }
 0x609   : > { %v1592_v28 = vpop.f32.mrf.mxu0 }
 0x60a   : > { %1313 = vst.msk [vmem:[%s324_s15] sm:$0xff] %vm330_vm1, %v1310_v27 }
 0x60b   : > { %1851 = shalt.err (!%p1848_p11)
}
 0x60c   : > { %s1852_s30 = scalar_lea.hbm %s2239_s1, 128  ;;  %s1856_s7 = scalar_lea.hbm %s2283_s6, 256 }
 0x60d   : > { %p1853_p13 = scmp.ne.s32.totalorder %s2239_s1, %s1852_s30  ;;  %p1857_p4 = scmp.lt.s32.totalorder %s2239_s1, %s2283_s6 }
 0x60e   : > { %p1858_p6 = scmp.lt.s32.totalorder %s1856_s7, %s1852_s30 }
 0x60f   : > { %p1854_p1 = pnand %p1853_p13, %p2303_p7 }
 0x610   : > { %p1859_p5 = por %p1858_p6, %p1857_p4 }
 0x611   : > { %p1855_p3 = pneg %p1854_p1 }
 0x613   : > { %p1860_p8 = pnand %p1859_p5, %p1855_p3 }
 0x615   : > { %1863 = shalt.err (!%p1860_p8)
}
 0x616   : > { %1611 = dma.vmem_to_hbm [thread:$0]  (%p2303_p7), %s1329_s12, 128, %s2239_s1, %s1315_s28  }
 0x617 PF: > { %s1340_s25 = sand.u32 1, %s1898_s21   ;;  %p2304_p10 = scmp.ne.s32.totalorder %s2295_s17, 0 }
 0x618   : > { %p2305_p0 = scmp.ge.s32.totalorder %s1910_s24, 2  ;;  %s1341_s15 = scalar_lea.sflag [#allocation5], %s1340_s25 }
 0x61a   : > { %p1631_p12 = pnand %p2305_p0, %p2304_p10 }
 0x61c   : > { %p1632_p2 = pneg %p1631_p12 }
 0x61e   : > { %1893 = dma.done.wait (%p1632_p2), %s1341_s15, 128  }
 0x61f   : > { %1895 = vsyncadd (%p1632_p2), %s1341_s15, 4294967168  ;;  %p21_p9 = scmp.ge.s32.totalorder %s2064_s9, 4   ;;  %s2306_s21 = smov %s1902_s22 }
 0x620   : > { %s2307_s22 = smov %s1906_s23  ;;  %s2308_s23 = smov %s2075_s14 }
 0x621   : > { %s2309_s24 = smov %s2064_s9  ;;  %23 = sbr.rel (!%p21_p9) target bundleno = 9 (0x9), region = 105 }
 0x626   :  { %1346 = vsyncpa [#allocation4], 1 }
 0x627   :  { %1348 = vsyncpa [#allocation4 + $0x1], 1 }
 0x628   :  { %1349 = vsyncpa [#allocation7], 1 }
 0x629   :  { %1350 = vsyncpa [#allocation10], 1 }
 0x62a   :  { %1351 = vsyncpa [#allocation5], 1 }
 0x62b   :  { %1353 = vsyncpa [#allocation5 + $0x1], 1 }

</bundles_post_ra>
